<compile_context>
chip_gen: v5e
topology: v5e:2x2
jax: 0.10.0
libtpu: 0.0.40
codegen_flags: <defaults>
</compile_context>

<pallas_src>
import functools

import jax
import jax.numpy as jnp
from jax import lax
from jax.experimental import pallas as pl
from jax.experimental.pallas import tpu as pltpu


def _round_up(x: int, m: int) -> int:
    return ((x + m - 1) // m) * m


def _vmem_budget_bytes() -> int:
    cap = 64 << 20                       # conservative fallback (v7x physical)
    try:
        cap = int(getattr(pltpu.get_tpu_info(), "vmem_capacity_bytes", cap))
    except Exception:
        pass
    return (cap * 3) // 4                # headroom: ~96 MiB v5e/v6e, ~48 MiB v7x


def _pooled_linear_kernel(x_ref, w_ref, b_ref, out_ref, acc_ref, *,
                          inv_t, t_true, tt, mask_time):
    # x_ref:   [TB, C, TT]   eeg tile (auto-DMA'd; edge blocks may be partial)
    # w_ref:   [C, E_pad]    backbone weight
    # b_ref:   [1, E_pad]    backbone bias
    # out_ref: [TB, E_pad]   embedding tile
    # acc_ref: [TB, C, 128]  lane-wide f32 partial-sum accumulator (VMEM)
    t = pl.program_id(1)

    @pl.when(t == 0)
    def _init():
        acc_ref[...] = jnp.zeros_like(acc_ref)

    if mask_time:
        lane = lax.broadcasted_iota(jnp.int32, acc_ref.shape, 2)  # (TB,C,128)
        base = t * tt

    # Accumulate tt//128 full-vreg lane groups (VALU only, no per-step XLU
    # reduce and no narrow masked stores).
    num_groups = tt // 128
    partial = None
    for g in range(num_groups):
        xg = x_ref[:, :, g * 128:(g + 1) * 128].astype(jnp.float32)
        if mask_time:
            valid = (base + g * 128 + lane) < t_true
            xg = jnp.where(valid, xg, 0.0)       # select: NaN-safe for OOB data
        partial = xg if partial is None else partial + xg
    acc_ref[...] += partial

    @pl.when(t == pl.num_programs(1) - 1)
    def _finalize():
        pooled = jnp.sum(acc_ref[...], axis=-1) * inv_t          # mean over TRUE T
        emb = jnp.dot(pooled, w_ref[...],
                      preferred_element_type=jnp.float32)        # [TB, E_pad] MXU
        out_ref[...] = (emb + b_ref[...]).astype(out_ref.dtype)


def eeg_classification_net_forward(eeg, w_backbone, b_backbone, *,
                                   tb=None, tt=None, input_dtype=None):
    """Equivalent of EEGClassificationNet.forward(eeg) -> embedding [B, E]."""
    B, C, T = eeg.shape
    Cw, E = w_backbone.shape
    assert Cw == C, "weight/channel mismatch"

    if input_dtype is not None and eeg.dtype != input_dtype:
        eeg = eeg.astype(input_dtype)    # e.g. bf16 to halve HBM read traffic

    E_pad = _round_up(E, 128)            # lane-dense output stores
    itemsize = eeg.dtype.itemsize

    # ---- tile sizes (lane-aligned time tiles, sublane-aligned batch tiles) --
    if tt is None:
        tt = min(2048, _round_up(T, 128))
    else:
        tt = max(128, _round_up(tt, 128))
    if tb is None:
        tb = min(128, _round_up(B, 8))
        if B > 8 and pl.cdiv(B, tb) < 2:     # >=2 batch blocks for v7x megacore
            tb = _round_up(pl.cdiv(B, 2), 8)
    else:
        tb = max(8, _round_up(tb, 8))

    # ---- VMEM-driven tile shrink (tt first, then tb) + explicit limit -------
    budget = _vmem_budget_bytes()

    def working_set(tb_, tt_):
        return (2 * tb_ * C * tt_ * itemsize     # double-buffered eeg tiles
                + 2 * tb_ * E_pad * 4            # double-buffered out tiles
                + 2 * (C + 1) * E_pad * 4        # weight + bias
                + tb_ * C * 128 * 4)             # accumulator scratch

    while working_set(tb, tt) > budget and tt > 512:
        tt = max(512, _round_up(tt // 2, 128))
    while working_set(tb, tt) > budget and tb > 8:
        tb = max(8, _round_up(tb // 2, 8))

    vmem_limit = int(min(max(working_set(tb, tt) + (8 << 20), 32 << 20),
                         budget + (8 << 20)))

    grid = (pl.cdiv(B, tb), pl.cdiv(T, tt))

    # Params are tiny; lane-pad them (cheap, O(C*E) not O(B*C*T)).
    w = w_backbone
    b = jnp.reshape(b_backbone, (1, E))
    if E_pad != E:
        w = jnp.pad(w, ((0, 0), (0, E_pad - E)))
        b = jnp.pad(b, ((0, 0), (0, E_pad - E)))

    kernel = functools.partial(
        _pooled_linear_kernel,
        inv_t=float(1.0 / T), t_true=T, tt=tt, mask_time=(T % tt != 0))

    cost = pl.CostEstimate(
        flops=B * C * T + 2 * B * C * E_pad,
        transcendentals=0,
        bytes_accessed=B * C * T * itemsize + (C + 1) * E_pad * 4
        + B * E_pad * 4)

    out = pl.pallas_call(
        kernel,
        out_shape=jax.ShapeDtypeStruct((B, E_pad), jnp.float32),
        grid_spec=pltpu.PrefetchScalarGridSpec(
            num_scalar_prefetch=0,
            grid=grid,
            in_specs=[
                pl.BlockSpec((tb, C, tt), lambda bi, ti: (bi, 0, ti)),  # eeg
                pl.BlockSpec((C, E_pad), lambda bi, ti: (0, 0)),        # W
                pl.BlockSpec((1, E_pad), lambda bi, ti: (0, 0)),        # bias
            ],
            out_specs=pl.BlockSpec((tb, E_pad), lambda bi, ti: (bi, 0)),
            scratch_shapes=[pltpu.VMEM((tb, C, 128), jnp.float32)],
        ),
        compiler_params=pltpu.CompilerParams(
            dimension_semantics=("parallel", "arbitrary"),
            vmem_limit_bytes=vmem_limit,
        ),
        cost_estimate=cost,
    )(eeg, w, b)

    return out[:, :E]


def _init_params(key, num_channels, embedding_dim, num_classes):
    """Deterministic synthetic parameter init (not a checkpoint)."""
    k1, k2, k3, k4 = jax.random.split(key, 4)
    lim_b = 1.0 / jnp.sqrt(num_channels)
    w_backbone = jax.random.uniform(k1, (num_channels, embedding_dim),
                                    jnp.float32, -lim_b, lim_b)
    b_backbone = jax.random.uniform(k2, (1, embedding_dim),
                                    jnp.float32, -lim_b, lim_b)
    # Classifier head mirrors nn.Sequential(nn.Linear(E, num_classes)) but is
    # NOT used in forward, matching the PyTorch module semantics exactly.
    lim_c = 1.0 / jnp.sqrt(embedding_dim)
    w_cls = jax.random.uniform(k3, (embedding_dim, num_classes),
                               jnp.float32, -lim_c, lim_c)
    b_cls = jax.random.uniform(k4, (1, num_classes),
                               jnp.float32, -lim_c, lim_c)
    return w_backbone, b_backbone, w_cls, b_cls


if __name__ == "__main__":
    # Small shapes consistent with an EEG forward pass; B and T intentionally
    # NOT multiples of the tiles to exercise the no-pad / in-kernel-mask path.
    B, C, T = 12, 16, 1000        # batch, EEG channels, time samples
    embedding_dim = 32
    num_classes = 4

    key = jax.random.PRNGKey(0)
    k_x, k_p = jax.random.split(key)
    eeg = jax.random.normal(k_x, (B, C, T), dtype=jnp.float32)

    w_backbone, b_backbone, w_cls, b_cls = _init_params(
        k_p, C, embedding_dim, num_classes)

    ref = jnp.mean(eeg, axis=-1) @ w_backbone + b_backbone

    # Default (auto-tiled) path: >=2 batch blocks, single partial time block.
    emb = eeg_classification_net_forward(eeg, w_backbone, b_backbone)
    emb = jax.block_until_ready(emb)
    assert emb.shape == (B, embedding_dim)
    assert jnp.allclose(emb, ref, atol=1e-5, rtol=1e-5), "mismatch (default)"

    # Explicit small tiles: (2 batch x 2 time) grid exercises the accumulator
    # re-init per batch block and the masked partial last time tile.
    emb2 = eeg_classification_net_forward(eeg, w_backbone, b_backbone,
                                          tb=8, tt=512)
    emb2 = jax.block_until_ready(emb2)
    assert jnp.allclose(emb2, ref, atol=1e-5, rtol=1e-5), "mismatch (tiled)"

    print("KERNEL_OK")
</pallas_src>

<mosaic_0001>
module attributes {stable_mosaic.version = 11 : i64} {
  func.func @_pooled_linear_kernel(%arg0: i32, %arg1: i32, %arg2: memref<8x16x1024xf32, #tpu.memory_space<vmem>>, %arg3: memref<16x128xf32, #tpu.memory_space<vmem>>, %arg4: memref<1x128xf32, #tpu.memory_space<vmem>>, %arg5: memref<8x128xf32, #tpu.memory_space<vmem>>, %arg6: memref<8x16x128xf32, #tpu.memory_space<vmem>>) attributes {dimension_semantics = [#tpu.dimension_semantics<parallel>, #tpu.dimension_semantics<arbitrary>], iteration_bounds = array<i64: 2, 1>, scalar_prefetch = 0 : i64, scratch_operands = 1 : i64, tpu.core_type = #tpu.core_type<tc>, window_params = [{transform_indices = @transform_0, window_bounds = array<i64: 8, 16, 1024>}, {pipeline_mode = #tpu.pipeline_mode<synchronous>, transform_indices = @transform_1, window_bounds = array<i64: 16, 128>}, {pipeline_mode = #tpu.pipeline_mode<synchronous>, transform_indices = @transform_2, window_bounds = array<i64: 1, 128>}, {transform_indices = @transform_3, window_bounds = array<i64: 8, 128>}]} {
    %c0_i32 = arith.constant 0 : i32
    %0 = arith.cmpi eq, %arg1, %c0_i32 : i32
    %1 = arith.extui %0 : i1 to i32
    %c0_i32_0 = arith.constant 0 : i32
    %2 = arith.cmpi ne, %1, %c0_i32_0 : i32
    scf.if %2 {
      %cst_40 = arith.constant 0.000000e+00 : f32
      %82 = vector.broadcast %cst_40 : f32 to vector<8x16x128xf32>
      %c0_41 = arith.constant 0 : index
      %c0_42 = arith.constant 0 : index
      %c0_43 = arith.constant 0 : index
      %83 = vector.load %arg6[%c0_41, %c0_42, %c0_43] : memref<8x16x128xf32, #tpu.memory_space<vmem>>, vector<8x16x128xf32>
      tpu.vector_store %arg6[%c0_41, %c0_42, %c0_43], %82 {strides = array<i32>} : memref<8x16x128xf32, #tpu.memory_space<vmem>>, vector<8x16x128xf32>,
    } else {
    }
    %3 = tpu.iota {dimensions = array<i32: 2>} : vector<8x16x128xi32>
    %c1024_i32 = arith.constant 1024 : i32
    %4 = arith.muli %arg1, %c1024_i32 : i32
    %c0 = arith.constant 0 : index
    %c0_1 = arith.constant 0 : index
    %c0_2 = arith.constant 0 : index
    %5 = vector.load %arg2[%c0, %c0_1, %c0_2] : memref<8x16x1024xf32, #tpu.memory_space<vmem>>, vector<8x16x128xf32>
    %c0_i32_3 = arith.constant 0 : i32
    %6 = arith.addi %4, %c0_i32_3 : i32
    %7 = vector.broadcast %6 : i32 to vector<8x16x128xi32>
    %8 = arith.addi %7, %3 : vector<8x16x128xi32>
    %c1000_i32 = arith.constant 1000 : i32
    %9 = vector.broadcast %c1000_i32 : i32 to vector<8x16x128xi32>
    %10 = arith.cmpi slt, %8, %9 : vector<8x16x128xi32>
    %cst = arith.constant 0.000000e+00 : f32
    %11 = vector.broadcast %cst : f32 to vector<8x16x128xf32>
    %12 = arith.select %10, %5, %11 : vector<8x16x128xi1>, vector<8x16x128xf32>
    %c0_4 = arith.constant 0 : index
    %c0_5 = arith.constant 0 : index
    %c128 = arith.constant 128 : index
    %13 = vector.load %arg2[%c0_4, %c0_5, %c128] : memref<8x16x1024xf32, #tpu.memory_space<vmem>>, vector<8x16x128xf32>
    %c128_i32 = arith.constant 128 : i32
    %14 = arith.addi %4, %c128_i32 : i32
    %15 = vector.broadcast %14 : i32 to vector<8x16x128xi32>
    %16 = arith.addi %15, %3 : vector<8x16x128xi32>
    %c1000_i32_6 = arith.constant 1000 : i32
    %17 = vector.broadcast %c1000_i32_6 : i32 to vector<8x16x128xi32>
    %18 = arith.cmpi slt, %16, %17 : vector<8x16x128xi32>
    %cst_7 = arith.constant 0.000000e+00 : f32
    %19 = vector.broadcast %cst_7 : f32 to vector<8x16x128xf32>
    %20 = arith.select %18, %13, %19 : vector<8x16x128xi1>, vector<8x16x128xf32>
    %21 = arith.addf %12, %20 : vector<8x16x128xf32>
    %c0_8 = arith.constant 0 : index
    %c0_9 = arith.constant 0 : index
    %c256 = arith.constant 256 : index
    %22 = vector.load %arg2[%c0_8, %c0_9, %c256] : memref<8x16x1024xf32, #tpu.memory_space<vmem>>, vector<8x16x128xf32>
    %c256_i32 = arith.constant 256 : i32
    %23 = arith.addi %4, %c256_i32 : i32
    %24 = vector.broadcast %23 : i32 to vector<8x16x128xi32>
    %25 = arith.addi %24, %3 : vector<8x16x128xi32>
    %c1000_i32_10 = arith.constant 1000 : i32
    %26 = vector.broadcast %c1000_i32_10 : i32 to vector<8x16x128xi32>
    %27 = arith.cmpi slt, %25, %26 : vector<8x16x128xi32>
    %cst_11 = arith.constant 0.000000e+00 : f32
    %28 = vector.broadcast %cst_11 : f32 to vector<8x16x128xf32>
    %29 = arith.select %27, %22, %28 : vector<8x16x128xi1>, vector<8x16x128xf32>
    %30 = arith.addf %21, %29 : vector<8x16x128xf32>
    %c0_12 = arith.constant 0 : index
    %c0_13 = arith.constant 0 : index
    %c384 = arith.constant 384 : index
    %31 = vector.load %arg2[%c0_12, %c0_13, %c384] : memref<8x16x1024xf32, #tpu.memory_space<vmem>>, vector<8x16x128xf32>
    %c384_i32 = arith.constant 384 : i32
    %32 = arith.addi %4, %c384_i32 : i32
    %33 = vector.broadcast %32 : i32 to vector<8x16x128xi32>
    %34 = arith.addi %33, %3 : vector<8x16x128xi32>
    %c1000_i32_14 = arith.constant 1000 : i32
    %35 = vector.broadcast %c1000_i32_14 : i32 to vector<8x16x128xi32>
    %36 = arith.cmpi slt, %34, %35 : vector<8x16x128xi32>
    %cst_15 = arith.constant 0.000000e+00 : f32
    %37 = vector.broadcast %cst_15 : f32 to vector<8x16x128xf32>
    %38 = arith.select %36, %31, %37 : vector<8x16x128xi1>, vector<8x16x128xf32>
    %39 = arith.addf %30, %38 : vector<8x16x128xf32>
    %c0_16 = arith.constant 0 : index
    %c0_17 = arith.constant 0 : index
    %c512 = arith.constant 512 : index
    %40 = vector.load %arg2[%c0_16, %c0_17, %c512] : memref<8x16x1024xf32, #tpu.memory_space<vmem>>, vector<8x16x128xf32>
    %c512_i32 = arith.constant 512 : i32
    %41 = arith.addi %4, %c512_i32 : i32
    %42 = vector.broadcast %41 : i32 to vector<8x16x128xi32>
    %43 = arith.addi %42, %3 : vector<8x16x128xi32>
    %c1000_i32_18 = arith.constant 1000 : i32
    %44 = vector.broadcast %c1000_i32_18 : i32 to vector<8x16x128xi32>
    %45 = arith.cmpi slt, %43, %44 : vector<8x16x128xi32>
    %cst_19 = arith.constant 0.000000e+00 : f32
    %46 = vector.broadcast %cst_19 : f32 to vector<8x16x128xf32>
    %47 = arith.select %45, %40, %46 : vector<8x16x128xi1>, vector<8x16x128xf32>
    %48 = arith.addf %39, %47 : vector<8x16x128xf32>
    %c0_20 = arith.constant 0 : index
    %c0_21 = arith.constant 0 : index
    %c640 = arith.constant 640 : index
    %49 = vector.load %arg2[%c0_20, %c0_21, %c640] : memref<8x16x1024xf32, #tpu.memory_space<vmem>>, vector<8x16x128xf32>
    %c640_i32 = arith.constant 640 : i32
    %50 = arith.addi %4, %c640_i32 : i32
    %51 = vector.broadcast %50 : i32 to vector<8x16x128xi32>
    %52 = arith.addi %51, %3 : vector<8x16x128xi32>
    %c1000_i32_22 = arith.constant 1000 : i32
    %53 = vector.broadcast %c1000_i32_22 : i32 to vector<8x16x128xi32>
    %54 = arith.cmpi slt, %52, %53 : vector<8x16x128xi32>
    %cst_23 = arith.constant 0.000000e+00 : f32
    %55 = vector.broadcast %cst_23 : f32 to vector<8x16x128xf32>
    %56 = arith.select %54, %49, %55 : vector<8x16x128xi1>, vector<8x16x128xf32>
    %57 = arith.addf %48, %56 : vector<8x16x128xf32>
    %c0_24 = arith.constant 0 : index
    %c0_25 = arith.constant 0 : index
    %c768 = arith.constant 768 : index
    %58 = vector.load %arg2[%c0_24, %c0_25, %c768] : memref<8x16x1024xf32, #tpu.memory_space<vmem>>, vector<8x16x128xf32>
    %c768_i32 = arith.constant 768 : i32
    %59 = arith.addi %4, %c768_i32 : i32
    %60 = vector.broadcast %59 : i32 to vector<8x16x128xi32>
    %61 = arith.addi %60, %3 : vector<8x16x128xi32>
    %c1000_i32_26 = arith.constant 1000 : i32
    %62 = vector.broadcast %c1000_i32_26 : i32 to vector<8x16x128xi32>
    %63 = arith.cmpi slt, %61, %62 : vector<8x16x128xi32>
    %cst_27 = arith.constant 0.000000e+00 : f32
    %64 = vector.broadcast %cst_27 : f32 to vector<8x16x128xf32>
    %65 = arith.select %63, %58, %64 : vector<8x16x128xi1>, vector<8x16x128xf32>
    %66 = arith.addf %57, %65 : vector<8x16x128xf32>
    %c0_28 = arith.constant 0 : index
    %c0_29 = arith.constant 0 : index
    %c896 = arith.constant 896 : index
    %67 = vector.load %arg2[%c0_28, %c0_29, %c896] : memref<8x16x1024xf32, #tpu.memory_space<vmem>>, vector<8x16x128xf32>
    %c896_i32 = arith.constant 896 : i32
    %68 = arith.addi %4, %c896_i32 : i32
    %69 = vector.broadcast %68 : i32 to vector<8x16x128xi32>
    %70 = arith.addi %69, %3 : vector<8x16x128xi32>
    %c1000_i32_30 = arith.constant 1000 : i32
    %71 = vector.broadcast %c1000_i32_30 : i32 to vector<8x16x128xi32>
    %72 = arith.cmpi slt, %70, %71 : vector<8x16x128xi32>
    %cst_31 = arith.constant 0.000000e+00 : f32
    %73 = vector.broadcast %cst_31 : f32 to vector<8x16x128xf32>
    %74 = arith.select %72, %67, %73 : vector<8x16x128xi1>, vector<8x16x128xf32>
    %75 = arith.addf %66, %74 : vector<8x16x128xf32>
    %c0_32 = arith.constant 0 : index
    %c0_33 = arith.constant 0 : index
    %c0_34 = arith.constant 0 : index
    %76 = vector.load %arg6[%c0_32, %c0_33, %c0_34] : memref<8x16x128xf32, #tpu.memory_space<vmem>>, vector<8x16x128xf32>
    %77 = arith.addf %76, %75 : vector<8x16x128xf32>
    %c0_35 = arith.constant 0 : index
    %c0_36 = arith.constant 0 : index
    %c0_37 = arith.constant 0 : index
    %78 = vector.load %arg6[%c0_35, %c0_36, %c0_37] : memref<8x16x128xf32, #tpu.memory_space<vmem>>, vector<8x16x128xf32>
    tpu.vector_store %arg6[%c0_35, %c0_36, %c0_37], %77 {strides = array<i32>} : memref<8x16x128xf32, #tpu.memory_space<vmem>>, vector<8x16x128xf32>,
    %c0_i32_38 = arith.constant 0 : i32
    %79 = arith.cmpi eq, %arg1, %c0_i32_38 : i32
    %80 = arith.extui %79 : i1 to i32
    %c0_i32_39 = arith.constant 0 : i32
    %81 = arith.cmpi ne, %80, %c0_i32_39 : i32
    scf.if %81 {
      %c0_40 = arith.constant 0 : index
      %c0_41 = arith.constant 0 : index
      %c0_42 = arith.constant 0 : index
      %82 = vector.load %arg6[%c0_40, %c0_41, %c0_42] : memref<8x16x128xf32, #tpu.memory_space<vmem>>, vector<8x16x128xf32>
      %cst_43 = arith.constant dense<0.000000e+00> : vector<8x16xf32>
      %83 = vector.multi_reduction <add>, %82, %cst_43 [2] : vector<8x16x128xf32> to vector<8x16xf32>
      %cst_44 = arith.constant 1.000000e-03 : f32
      %84 = vector.broadcast %cst_44 : f32 to vector<8x16xf32>
      %85 = arith.mulf %83, %84 : vector<8x16xf32>
      %c0_45 = arith.constant 0 : index
      %c0_46 = arith.constant 0 : index
      %86 = vector.load %arg3[%c0_45, %c0_46] : memref<16x128xf32, #tpu.memory_space<vmem>>, vector<16x128xf32>
      %cst_47 = arith.constant dense<0.000000e+00> : vector<8x128xf32>
      %87 = tpu.matmul %85, %86, %cst_47 {dimension_numbers = #tpu.dot_dimension_numbers<[1], [0], [0], [1], [0, 0, 1, 1], [], []>} : vector<8x16xf32>, vector<16x128xf32>, vector<8x128xf32> -> vector<8x128xf32>
      %c0_48 = arith.constant 0 : index
      %c0_49 = arith.constant 0 : index
      %88 = vector.load %arg4[%c0_48, %c0_49] : memref<1x128xf32, #tpu.memory_space<vmem>>, vector<1x128xf32>
      %89 = vector.broadcast %88 : vector<1x128xf32> to vector<8x128xf32>
      %90 = arith.addf %87, %89 : vector<8x128xf32>
      %c0_50 = arith.constant 0 : index
      %c0_51 = arith.constant 0 : index
      %91 = vector.load %arg5[%c0_50, %c0_51] : memref<8x128xf32, #tpu.memory_space<vmem>>, vector<8x128xf32>
      tpu.vector_store %arg5[%c0_50, %c0_51], %90 {strides = array<i32>} : memref<8x128xf32, #tpu.memory_space<vmem>>, vector<8x128xf32>,
    } else {
    }
    return
  }
  func.func @transform_0(%arg0: i32, %arg1: i32) -> (i32, i32, i32) {
    %c0_i32 = arith.constant 0 : i32
    %c0_i32_0 = arith.constant 0 : i32
    return %arg0, %c0_i32, %arg1 : i32, i32, i32
  }
  func.func @transform_1(%arg0: i32, %arg1: i32) -> (i32, i32) {
    %c0_i32 = arith.constant 0 : i32
    %c0_i32_0 = arith.constant 0 : i32
    %c0_i32_1 = arith.constant 0 : i32
    return %c0_i32, %c0_i32_0 : i32, i32
  }
  func.func @transform_2(%arg0: i32, %arg1: i32) -> (i32, i32) {
    %c0_i32 = arith.constant 0 : i32
    %c0_i32_0 = arith.constant 0 : i32
    %c0_i32_1 = arith.constant 0 : i32
    return %c0_i32, %c0_i32_0 : i32, i32
  }
  func.func @transform_3(%arg0: i32, %arg1: i32) -> (i32, i32) {
    %c0_i32 = arith.constant 0 : i32
    %c0_i32_0 = arith.constant 0 : i32
    return %arg0, %c0_i32 : i32, i32
  }
}

</mosaic_0001>

<bundles_post_ra>
// kernel: tpu_custom_call.1
= control target key start
LH: loop header
LB: loop body
LE: loop exit
PB: predicated region body
PF: predicated region fallthrough
CT: control target
= control target key end

     0   :  { %8 = vsyncpa [#allocation4], 0  ;;  %s1630_s0 = inlined_call_operand.hbm [shape: f32[12,16,1000], index: 0, kind: input, shape index: {}]   ;;  %s1631_s1 = inlined_call_operand.hbm [shape: f32[16,128], index: 1, kind: input, shape index: {}]   ;;  %s1632_s2 = inlined_call_operand.vmem [shape: f32[1,128], index: 2, kind: input, shape index: {}]   ;;  %s1633_s3 = inlined_call_operand.hbm [shape: f32[12,128], index: 3, kind: output, shape index: {}]  }
   0x1   :  { %10 = vsyncpa [#allocation4 + $0x1], 0 }
   0x2   :  { %11 = vsyncpa [#allocation7], 0 }
   0x3   :  { %12 = vsyncpa [#allocation5], 0 }
   0x4   :  { %14 = vsyncpa [#allocation5 + $0x1], 0  ;;  %s1259_s12 = smov 0   ;;  %s1261_s13 = smov 0  }
   0x5   :  { %s1263_s14 = smov 0   ;;  %s1265_s15 = smov 0  }
   0x6   :  { %s1267_s16 = smov 0   ;;  %s1269_s17 = smov 0  }
   0x7 LB: > { %s973_s18 = sadd.s32 4294967295, %s1231_s17   ;;  %s974_s19 = sadd.s32 4294967294, %s1231_s17   ;;  %s1231_s17 = sphi %s1269_s17, %s20_s17   ;;  %s1227_s16 = sphi %s1267_s16, %s1649_s16   ;;  %s1223_s15 = sphi %s1265_s15, %s1648_s15   ;;  %s1219_s14 = sphi %s1263_s14, %s1647_s14   ;;  %s1215_s13 = sphi %s1261_s13, %s1646_s13   ;;  %s1211_s12 = sphi %s1259_s12, %s1645_s12  }
   0x8   : > { %s32_s20 = sadd.s32 1, %s1227_s16  ;;  %s41_s21 = sadd.s32 1, %s1219_s14 }
   0x9   : > { %p34_p0 = scmp.ge.s32.totalorder %s32_s20, 2  ;;  %p48_p1 = scmp.ne.s32.totalorder %s1219_s14, %s1215_s13 }
   0xa   : > { %p49_p2 = scmp.eq.s32.totalorder %s1231_s17, 0  ;;  %p54_p3 = scmp.ne.s32.totalorder %s1215_s13, %s1211_s12 }
   0xb   : > { %s1651_s20 = smov (%p34_p0, %s32_s20), 0  ;;  %p1304_p5 = scmp.eq.s32.totalorder %s973_s18, 0 }
   0xc   : > { %p1300_p4 = por %p49_p2, %p48_p1  ;;  %s36_s24 = ssub.s32 %s1227_s16, %s1651_s20 }
   0xd   : > { %p120_p6 = scmp.eq.s32.totalorder %s973_s18, 1  ;;  %p39_p7 = scmp.eq.s32.totalorder %s36_s24, 0 }
   0xe   : > { %p1312_p8 = por %p1304_p5, %p54_p3  ;;  %p126_p10 = scmp.eq.s32.totalorder %s974_s19, 1 }
   0xf   : > { %p1316_p9 = por %p120_p6, %p48_p1  ;;  %p975_p12 = scmp.ge.s32.totalorder %s1231_s17, 1 }
  0x10   : > { %s1321_s27 = scalar_select %p39_p7, %s1219_s14, %s41_s21  }
  0x11   : > { %p1323_p11 = por %p126_p10, %p54_p3  ;;  %p133_p13 = scmp.lt.s32.totalorder %s1231_s17, 3 }
  0x12   : > { %s144_s4 = sshll.u32 %s1631_s1, 4  ;;  %s1233_s6 = smov [#allocation6]   ;;  %s145_s4 = int_to_ptr.hbm [resolvable:$true] %s144_s4 }
  0x13   : > { %p1332_p0 = pnand %p975_p12, %p133_p13  ;;  %s146_s7 = sshll.u32 %s1233_s6, 4  ;;  %s147_s7 = int_to_ptr.vmem [resolvable:$true] %s146_s7 }
  0x14   : > { %s1234_s8 = smov 128   ;;  %s1235_s9 = smov 8  }
  0x15   : > { %p1011_p1 = pneg %p1332_p0  ;;  %p1634_p3 = scmp.ge.s32.totalorder %s1231_s17, 2 }
  0x17   : > { %p1012_p2 = pnand %p1011_p1, %p1304_p5  ;;  %159 = sbr.rel (%p1634_p3) target bundleno = 65 (0x41), region = 24 }
  0x19   : > { %1014 = dma.hbm_to_vmem [thread:$0]  (!%p1012_p2), %s145_s4, 256, %s147_s7, [#allocation7], %s1234_s8, %s1234_s8, %s1235_s9  }
  0x1c   : > { %162 = sbr.rel (!%p1300_p4) target bundleno = 65 (0x41), region = 28  ;;  %s163_s10 = sand.u32 (%p1300_p4), 1, %s1219_s14  }
  0x1d   : > { %s979_s11 = sshll.u32 (%p1300_p4), %s1227_s16, 3  ;;  %s978_s18 = sshll.u32 (%p1300_p4), %s163_s10, 10 }
  0x1e   : > { %s170_s19 = ssub.s32 (%p1300_p4), 12, %s979_s11  ;;  %s1350_s30 = scalar_lea.sflag (%p1300_p4), [#allocation4], %s163_s10 }
  0x1f   : > { %p171_p6 = scmp.lt.s32.totalorder (%p1300_p4), %s170_s19, 8  ;;  %s167_s4 = scalar_lea.vmem (%p1300_p4), [#allocation3], %s978_s18 }
  0x21   : > { %s1653_s19 = smov (!%p171_p6, %s170_s19), 8 }
  0x22   : > { %s999_s21 = sshll.u32 %s1653_s19, 7 }
  0x23   : > { %s176_s24 = ssub.s32 1024, %s999_s21 }
  0x24   : > { %s177_s29 = sshll.u32 %s176_s24, 4 }
  0x25   : > { %178 = vsyncadd %s1350_s30, %s177_s29  ;;  %p1353_p4 = scmp.ne.s32.totalorder %s999_s21, 0  ;;  %s1001_s6 = sshll.u32 %s1227_s16, 10 }
  0x26   : > { %s183_s9 = scalar_lea.hbm %s1630_s0, %s1001_s6  ;;  %s1361_s11 = sshll.u32 %s167_s4, 4  ;;  %s189_s11 = int_to_ptr.vmem [resolvable:$true] %s1361_s11 }
  0x27   : > { %s186_s10 = sshll.u32 %s183_s9, 4  ;;  %s1635_s18 = sshll.u32 %s1653_s19, 11  ;;  %s1364_s10 = int_to_ptr.hbm [resolvable:$true] %s186_s10 }
  0x28   : > { %s1106_s24 = sshra.s32 %s1364_s10, 4  ;;  %s1108_s21 = sshrl.u32 %s1635_s18, 4  ;;  %s1107_s24 = int_to_ptr.hbm [resolvable:$true] %s1106_s24 }
  0x29   : > { %s1113_s29 = scalar_lea.hbm %s1107_s24, %s1108_s21  ;;  %s1117_s4 = scalar_lea.hbm %s1630_s0, 1536 }
  0x2a   : > { %p1114_p7 = scmp.ne.s32.totalorder %s1107_s24, %s1113_s29  ;;  %p1119_p13 = scmp.lt.s32.totalorder %s1117_s4, %s1113_s29 }
  0x2c   : > { %p1115_p10 = pnand %p1114_p7, %p1353_p4 }
  0x2e   : > { %p1116_p12 = pneg %p1115_p10 }
  0x30   : > { %p1121_p1 = pnand %p1119_p13, %p1116_p12 }
  0x32   : > { %1124 = shalt.err (!%p1121_p1)
}
  0x33   : > { %s1125_s8 = sshra.s32 %s189_s11, 4  ;;  %s1236_s24 = smov [#allocation3]   ;;  %s1126_s8 = int_to_ptr.vmem [resolvable:$true] %s1125_s8 }
  0x34   : > { %s1132_s9 = scalar_lea.vmem %s1126_s8, %s1108_s21  ;;  %s1136_s18 = scalar_lea.vmem %s1236_s24, 2048 }
  0x35   : > { %p1133_p2 = scmp.ne.s32.totalorder %s1126_s8, %s1132_s9  ;;  %p1138_p7 = scmp.lt.s32.totalorder %s1136_s18, %s1132_s9 }
  0x37   : > { %p1134_p6 = pnand %p1133_p2, %p1353_p4 }
  0x39   : > { %p1135_p3 = pneg %p1134_p6 }
  0x3b   : > { %p1140_p10 = pnand %p1138_p7, %p1135_p3 }
  0x3d   : > { %1143 = shalt.err (!%p1140_p10)
}
  0x3e   : > { %s1237_s7 = smov 1024   ;;  %s1238_s29 = smov 64  }
  0x3f   : > { %s1643_s6 = sshll.u32 %s1653_s19, 11 }
  0x40   : > { %194 = dma.hbm_to_vmem [thread:$0]  (%p1353_p4), %s1364_s10, %s1643_s6, %s189_s11, %s1350_s30, %s1237_s7, %s1237_s7, %s1238_s29  }
  0x41 PF: > { %200 = sbr.rel (%p1332_p0) target bundleno = 384 (0x180), region = 32  ;;  %s1390_s18 = sand.u32 (!%p1332_p0), 1, %s1215_s13  }
  0x42   : > { %s990_s21 = sshll.u32 (!%p1332_p0), %s1390_s18, 10  ;;  %s203_s4 = scalar_lea.sflag (!%p1332_p0), [#allocation4], %s1390_s18 }
  0x43   : > { %s1394_s8 = scalar_lea.vmem (!%p1332_p0), [#allocation3], %s990_s21 }
  0x46   : > { %1198 = dma.done.wait (%p1312_p8), %s203_s4, 16384  }
  0x47   : > { %1200 = vsyncadd (%p1312_p8), %s203_s4, 4294950912 }
  0x48   : > { %1202 = dma.done.wait (%p1304_p5), [#allocation7], 256  }
  0x49   : > { %1204 = vsyncadd (%p1304_p5), [#allocation7], 4294967040  ;;  %v263_v0 = vlaneseq  ;;  %v270_v2 = vld [vmem:[%s1394_s8 + $0x100] sm:$0xff]  ;;  %v305_v3 = vld [vmem:[%s1394_s8 + $0x108] sm:$0xff]  ;;  %vm805_vm1 = vcmask 130112   ;;  %vm828_vm2 = vcmask 1041409  }
  0x4a   : > { %v357_v4 = vld [vmem:[%s1394_s8 + $0x110] sm:$0xff]  ;;  %v341_v5 = vadd.f32 %v305_v3, %v270_v2  ;;  %v409_v6 = vld [vmem:[%s1394_s8 + $0x118] sm:$0xff]  ;;  %v268_v7 = vld [vmem:[%s1394_s8 + $0x80] sm:$0xff]  ;;  %vm830_vm3 = vcmask 1042434   ;;  %vm832_vm4 = vcmask 1043459   ;;  %vm834_vm5 = vcmask 1044484  }
  0x4b   : > { %v1404_v1 = vand.u32 127, %v263_v0  ;;  %v303_v10 = vld [vmem:[%s1394_s8 + $0x88] sm:$0xff]  ;;  %v355_v11 = vld [vmem:[%s1394_s8 + $0x90] sm:$0xff]  ;;  %v461_v12 = vld [vmem:[%s1394_s8 + $0x120] sm:$0xff]  ;;  %vm836_vm6 = vcmask 1045509   ;;  %vm838_vm7 = vcmask 1046534  }
  0x4c   : > { %v393_v8 = vadd.f32 %v357_v4, %v341_v5  ;;  %v339_v13 = vadd.f32 %v303_v10, %v268_v7  ;;  %v407_v15 = vld [vmem:[%s1394_s8 + $0x98] sm:$0xff]  ;;  %v266_v16 = vld [vmem:[%s1394_s8] sm:$0xff]  ;;  %v301_v17 = vld [vmem:[%s1394_s8 + $0x8] sm:$0xff]  ;;  %vm840_vm8 = vcmask 1047559   ;;  %vm842_vm9 = vcmask 130048   ;;  %s992_s23 = sshll.u32 %s1390_s18, 3 }
  0x4d   : > { %v1412_v9 = vadd.s32 896, %v1404_v1  ;;  %v513_v18 = vld [vmem:[%s1394_s8 + $0x128] sm:$0xff]  ;;  %v565_v19 = vld [vmem:[%s1394_s8 + $0x130] sm:$0xff]  ;;  %v337_v21 = vadd.f32 %v301_v17, %v266_v16  ;;  %v617_v24 = vld [vmem:[%s1394_s8 + $0x138] sm:$0xff]  ;;  %s995_s25 = sshll.u32 %s1223_s15, 3  ;;  %s234_s10 = scalar_lea.vmem [#allocation8], %s992_s23 }
  0x4e   : > { %v445_v14 = vadd.f32 %v409_v6, %v393_v8  ;;  %v391_v20 = vadd.f32 %v355_v11, %v339_v13  ;;  %v353_v22 = vld [vmem:[%s1394_s8 + $0x10] sm:$0xff]  ;;  %v459_v25 = vld [vmem:[%s1394_s8 + $0xa0] sm:$0xff]  ;;  %v405_v26 = vld [vmem:[%s1394_s8 + $0x18] sm:$0xff]  ;;  %s877_s30 = scalar_lea.hbm %s1633_s3, %s995_s25  ;;  %s879_s9 = sshll.u32 %s234_s10, 4  ;;  %s880_s9 = int_to_ptr.vmem [resolvable:$true] %s879_s9 }
  0x4f   : > { %vm632_vm0 = vcmp.lt.s32.totalorder %v1412_v9, 1000  ;;  %v389_v28 = vadd.f32 %v353_v22, %v337_v21  ;;  %v271_v29 = vld [vmem:[%s1394_s8 + $0x140] sm:$0xff]  ;;  %v306_v30 = vld [vmem:[%s1394_s8 + $0x148] sm:$0xff]  ;;  %v358_v31 = vld [vmem:[%s1394_s8 + $0x150] sm:$0xff]  ;;  %s881_s24 = sshll.u32 %s877_s30, 4  ;;  %s867_s7 = scalar_lea.sflag [#allocation5], %s1390_s18  ;;  %s882_s24 = int_to_ptr.hbm [resolvable:$true] %s881_s24 }
  0x50   : > { %v497_v23 = vadd.f32 %v461_v12, %v445_v14  ;;  %v443_v27 = vadd.f32 %v407_v15, %v391_v20  ;;  %v511_v33 = vld [vmem:[%s1394_s8 + $0xa8] sm:$0xff]  ;;  %v563_v34 = vld [vmem:[%s1394_s8 + $0xb0] sm:$0xff]  ;;  %v457_v35 = vld [vmem:[%s1394_s8 + $0x20] sm:$0xff]  ;;  %v342_v36 = vadd.f32 %v306_v30, %v271_v29  ;;  %v637_v37 = vsel %vm632_vm0, %v617_v24, 0.0  ;;  %s1159_s29 = sshra.s32 %s882_s24, 4  ;;  %s1165_s4 = scalar_lea.hbm %s1633_s3, 16  ;;  %s1160_s29 = int_to_ptr.hbm [resolvable:$true] %s1159_s29 }
  0x51   : > { %v615_v39 = vld [vmem:[%s1394_s8 + $0xb8] sm:$0xff]  ;;  %v441_v40 = vadd.f32 %v405_v26, %v389_v28  ;;  %v269_v42 = vld [vmem:[%s1394_s8 + $0xc0] sm:$0xff]  ;;  %v509_v44 = vld [vmem:[%s1394_s8 + $0x28] sm:$0xff]  ;;  %s1161_s15 = scalar_lea.hbm %s1160_s29, 8  ;;  %p1166_p3 = scmp.lt.s32.totalorder %s1160_s29, %s1633_s3 }
  0x52   : > { %v549_v32 = vadd.f32 %v513_v18, %v497_v23  ;;  %v495_v38 = vadd.f32 %v459_v25, %v443_v27  ;;  %v410_v41 = vld [vmem:[%s1394_s8 + $0x158] sm:$0xff]  ;;  %v394_v45 = vadd.f32 %v358_v31, %v342_v36  ;;  %v304_v46 = vld [vmem:[%s1394_s8 + $0xc8] sm:$0xff]  ;;  %v356_v47 = vld [vmem:[%s1394_s8 + $0xd0] sm:$0xff]  ;;  %v635_v55 = vsel %vm632_vm0, %v615_v39, 0.0  ;;  %p1162_p5 = scmp.ne.s32.totalorder %s1160_s29, %s1161_s15  ;;  %p1167_p4 = scmp.lt.s32.totalorder %s1165_s4, %s1161_s15 }
  0x53   : > { %v493_v49 = vadd.f32 %v457_v35, %v441_v40  ;;  %v561_v50 = vld [vmem:[%s1394_s8 + $0x30] sm:$0xff]  ;;  %v613_v51 = vld [vmem:[%s1394_s8 + $0x38] sm:$0xff]  ;;  %v462_v52 = vld [vmem:[%s1394_s8 + $0x160] sm:$0xff]  ;;  %v340_v53 = vadd.f32 %v304_v46, %v269_v42 }
  0x54   : > { %v601_v43 = vadd.f32 %v565_v19, %v549_v32  ;;  %v547_v48 = vadd.f32 %v511_v33, %v495_v38  ;;  %v446_v56 = vadd.f32 %v410_v41, %v394_v45  ;;  %v408_v57 = vld [vmem:[%s1394_s8 + $0xd8] sm:$0xff]  ;;  %v267_v58 = vld [vmem:[%s1394_s8 + $0x40] sm:$0xff]  ;;  %v302_v59 = vld [vmem:[%s1394_s8 + $0x48] sm:$0xff]  ;;  %v633_v3 = vsel %vm632_vm0, %v613_v51, 0.0  ;;  %p1163_p8 = pnand %p1162_p5, %p1316_p9  ;;  %p1168_p12 = por %p1167_p4, %p1166_p3 }
  0x55   : > { %v545_v61 = vadd.f32 %v509_v44, %v493_v49  ;;  %v514_v62 = vld [vmem:[%s1394_s8 + $0x168] sm:$0xff]  ;;  %v566_v63 = vld [vmem:[%s1394_s8 + $0x170] sm:$0xff]  ;;  %v392_v0 = vadd.f32 %v356_v47, %v340_v53  ;;  %v618_v5 = vld [vmem:[%s1394_s8 + $0x178] sm:$0xff]  ;;  %v338_v7 = vadd.f32 %v302_v59, %v267_v58 }
  0x56   : > { %v653_v54 = vadd.f32 %v637_v37, %v601_v43  ;;  %v599_v60 = vadd.f32 %v563_v34, %v547_v48  ;;  %v354_v2 = vld [vmem:[%s1394_s8 + $0x50] sm:$0xff]  ;;  %v498_v4 = vadd.f32 %v462_v52, %v446_v56  ;;  %v460_v6 = vld [vmem:[%s1394_s8 + $0xe0] sm:$0xff]  ;;  %v406_v8 = vld [vmem:[%s1394_s8 + $0x58] sm:$0xff]  ;;  %v638_v23 = vsel %vm632_vm0, %v618_v5, 0.0  ;;  %p1164_p0 = pneg %p1163_p8 }
  0x57   : > { %v597_v11 = vadd.f32 %v561_v50, %v545_v61  ;;  %v444_v12 = vadd.f32 %v408_v57, %v392_v0  ;;  %v273_v13 = vld [vmem:[%s1394_s8 + $0x1c0] sm:$0xff]  ;;  %v308_v14 = vld [vmem:[%s1394_s8 + $0x1c8] sm:$0xff]  ;;  %v360_v15 = vld [vmem:[%s1394_s8 + $0x1d0] sm:$0xff]  ;;  %v390_v20 = vadd.f32 %v354_v2, %v338_v7 }
  0x58   : > { %740 = vadd.xlane.f32.xlu2 %v653_v54  ;;  %v651_v10 = vadd.f32 %v635_v55, %v599_v60  ;;  %v550_v16 = vadd.f32 %v514_v62, %v498_v4  ;;  %v512_v17 = vld [vmem:[%s1394_s8 + $0xe8] sm:$0xff]  ;;  %v564_v18 = vld [vmem:[%s1394_s8 + $0xf0] sm:$0xff]  ;;  %v616_v19 = vld [vmem:[%s1394_s8 + $0xf8] sm:$0xff]  ;;  %v344_v21 = vadd.f32 %v308_v14, %v273_v13  ;;  %p1169_p13 = pnand %p1168_p12, %p1164_p0 }
  0x59   : > { %v649_v22 = vadd.f32 %v633_v3, %v597_v11  ;;  %v496_v24 = vadd.f32 %v460_v6, %v444_v12  ;;  %v458_v25 = vld [vmem:[%s1394_s8 + $0x60] sm:$0xff]  ;;  %v412_v26 = vld [vmem:[%s1394_s8 + $0x1d8] sm:$0xff]  ;;  %v442_v29 = vadd.f32 %v406_v8, %v390_v20  ;;  %v510_v30 = vld [vmem:[%s1394_s8 + $0x68] sm:$0xff]  ;;  %v636_v40 = vsel %vm632_vm0, %v616_v19, 0.0 }
  0x5a   : > { %736 = vadd.xlane.f32.xlu1 %v651_v10  ;;  %v272_v27 = vld [vmem:[%s1394_s8 + $0x180] sm:$0xff]  ;;  %v602_v28 = vadd.f32 %v566_v63, %v550_v16  ;;  %v396_v31 = vadd.f32 %v360_v15, %v344_v21  ;;  %v307_v32 = vld [vmem:[%s1394_s8 + $0x188] sm:$0xff]  ;;  %v359_v33 = vld [vmem:[%s1394_s8 + $0x190] sm:$0xff] }
  0x5b   : > { %732 = vadd.xlane.f32.xlu0 %v649_v22  ;;  %v548_v34 = vadd.f32 %v512_v17, %v496_v24  ;;  %v562_v35 = vld [vmem:[%s1394_s8 + $0x70] sm:$0xff]  ;;  %v614_v36 = vld [vmem:[%s1394_s8 + $0x78] sm:$0xff]  ;;  %v464_v37 = vld [vmem:[%s1394_s8 + $0x1e0] sm:$0xff]  ;;  %v343_v38 = vadd.f32 %v307_v32, %v272_v27  ;;  %v494_v41 = vadd.f32 %v458_v25, %v442_v29 }
  0x5c   : > { %v654_v39 = vadd.f32 %v638_v23, %v602_v28  ;;  %v448_v42 = vadd.f32 %v412_v26, %v396_v31  ;;  %v411_v43 = vld [vmem:[%s1394_s8 + $0x198] sm:$0xff]  ;;  %v274_v44 = vld [vmem:[%s1394_s8 + $0x200] sm:$0xff]  ;;  %v309_v45 = vld [vmem:[%s1394_s8 + $0x208] sm:$0xff]  ;;  %v634_v58 = vsel %vm632_vm0, %v614_v36, 0.0 }
  0x5d   : > { %v600_v46 = vadd.f32 %v564_v18, %v548_v34  ;;  %v516_v47 = vld [vmem:[%s1394_s8 + $0x1e8] sm:$0xff]  ;;  %v568_v48 = vld [vmem:[%s1394_s8 + $0x1f0] sm:$0xff]  ;;  %v395_v49 = vadd.f32 %v359_v33, %v343_v38  ;;  %v345_v50 = vadd.f32 %v309_v45, %v274_v44  ;;  %v546_v52 = vadd.f32 %v510_v30, %v494_v41  ;;  %v620_v54 = vld [vmem:[%s1394_s8 + $0x1f8] sm:$0xff] }
  0x5e   : > { %v361_v51 = vld [vmem:[%s1394_s8 + $0x210] sm:$0xff]  ;;  %v500_v53 = vadd.f32 %v464_v37, %v448_v42  ;;  %v463_v55 = vld [vmem:[%s1394_s8 + $0x1a0] sm:$0xff]  ;;  %v413_v56 = vld [vmem:[%s1394_s8 + $0x218] sm:$0xff]  ;;  %v640_v15 = vsel %vm632_vm0, %v620_v54, 0.0 }
  0x5f   : > { %v652_v57 = vadd.f32 %v636_v40, %v600_v46  ;;  %v447_v59 = vadd.f32 %v411_v43, %v395_v49  ;;  %v397_v60 = vadd.f32 %v361_v51, %v345_v50  ;;  %v276_v61 = vld [vmem:[%s1394_s8 + $0x280] sm:$0xff]  ;;  %v311_v62 = vld [vmem:[%s1394_s8 + $0x288] sm:$0xff]  ;;  %v363_v63 = vld [vmem:[%s1394_s8 + $0x290] sm:$0xff]  ;;  %v598_v0 = vadd.f32 %v562_v35, %v546_v52 }
  0x60   : > { %742 = vadd.xlane.f32.xlu2 %v654_v39  ;;  %v552_v2 = vadd.f32 %v516_v47, %v500_v53  ;;  %v515_v3 = vld [vmem:[%s1394_s8 + $0x1a8] sm:$0xff]  ;;  %v567_v4 = vld [vmem:[%s1394_s8 + $0x1b0] sm:$0xff]  ;;  %v465_v5 = vld [vmem:[%s1394_s8 + $0x220] sm:$0xff]  ;;  %v347_v6 = vadd.f32 %v311_v62, %v276_v61 }
  0x61   : > { %v499_v7 = vadd.f32 %v463_v55, %v447_v59  ;;  %v619_v8 = vld [vmem:[%s1394_s8 + $0x1b8] sm:$0xff]  ;;  %v449_v10 = vadd.f32 %v413_v56, %v397_v60  ;;  %v275_v12 = vld [vmem:[%s1394_s8 + $0x240] sm:$0xff]  ;;  %v650_v13 = vadd.f32 %v634_v58, %v598_v0  ;;  %v517_v16 = vld [vmem:[%s1394_s8 + $0x228] sm:$0xff] }
  0x62   : > { %738 = vadd.xlane.f32.xlu1 %v652_v57  ;;  %v415_v11 = vld [vmem:[%s1394_s8 + $0x298] sm:$0xff]  ;;  %v604_v14 = vadd.f32 %v568_v48, %v552_v2  ;;  %v399_v17 = vadd.f32 %v363_v63, %v347_v6  ;;  %v310_v18 = vld [vmem:[%s1394_s8 + $0x248] sm:$0xff]  ;;  %v362_v19 = vld [vmem:[%s1394_s8 + $0x250] sm:$0xff]  ;;  %v639_v26 = vsel %vm632_vm0, %v619_v8, 0.0 }
  0x63   : > { %v551_v20 = vadd.f32 %v515_v3, %v499_v7  ;;  %v501_v21 = vadd.f32 %v465_v5, %v449_v10  ;;  %v569_v22 = vld [vmem:[%s1394_s8 + $0x230] sm:$0xff]  ;;  %v621_v23 = vld [vmem:[%s1394_s8 + $0x238] sm:$0xff]  ;;  %v467_v24 = vld [vmem:[%s1394_s8 + $0x2a0] sm:$0xff]  ;;  %v346_v25 = vadd.f32 %v310_v18, %v275_v12  ;;  %734 = vadd.xlane.f32.xlu0 %v650_v13 }
  0x64   : > { %v451_v27 = vadd.f32 %v415_v11, %v399_v17  ;;  %v414_v28 = vld [vmem:[%s1394_s8 + $0x258] sm:$0xff]  ;;  %v277_v29 = vld [vmem:[%s1394_s8 + $0x2c0] sm:$0xff]  ;;  %v312_v30 = vld [vmem:[%s1394_s8 + $0x2c8] sm:$0xff]  ;;  %v656_v31 = vadd.f32 %v640_v15, %v604_v14  ;;  %v641_v38 = vsel %vm632_vm0, %v621_v23, 0.0 }
  0x65   : > { %v603_v32 = vadd.f32 %v567_v4, %v551_v20  ;;  %v553_v33 = vadd.f32 %v517_v16, %v501_v21  ;;  %v519_v34 = vld [vmem:[%s1394_s8 + $0x2a8] sm:$0xff]  ;;  %v571_v35 = vld [vmem:[%s1394_s8 + $0x2b0] sm:$0xff]  ;;  %v398_v36 = vadd.f32 %v362_v19, %v346_v25  ;;  %v623_v40 = vld [vmem:[%s1394_s8 + $0x2b8] sm:$0xff]  ;;  %v348_v42 = vadd.f32 %v312_v30, %v277_v29 }
  0x66   : > { %v364_v37 = vld [vmem:[%s1394_s8 + $0x2d0] sm:$0xff]  ;;  %v503_v39 = vadd.f32 %v467_v24, %v451_v27  ;;  %v466_v41 = vld [vmem:[%s1394_s8 + $0x260] sm:$0xff]  ;;  %v416_v43 = vld [vmem:[%s1394_s8 + $0x2d8] sm:$0xff]  ;;  %v643_v62 = vsel %vm632_vm0, %v623_v40, 0.0 }
  0x67   : > { %v605_v44 = vadd.f32 %v569_v22, %v553_v33  ;;  %v450_v45 = vadd.f32 %v414_v28, %v398_v36  ;;  %v279_v46 = vld [vmem:[%s1394_s8 + $0x340] sm:$0xff]  ;;  %v314_v47 = vld [vmem:[%s1394_s8 + $0x348] sm:$0xff]  ;;  %v366_v48 = vld [vmem:[%s1394_s8 + $0x350] sm:$0xff]  ;;  %v655_v49 = vadd.f32 %v639_v26, %v603_v32  ;;  %v400_v54 = vadd.f32 %v364_v37, %v348_v42 }
  0x68   : > { %v555_v50 = vadd.f32 %v519_v34, %v503_v39  ;;  %v518_v51 = vld [vmem:[%s1394_s8 + $0x268] sm:$0xff]  ;;  %v570_v52 = vld [vmem:[%s1394_s8 + $0x270] sm:$0xff]  ;;  %v622_v53 = vld [vmem:[%s1394_s8 + $0x278] sm:$0xff]  ;;  %v350_v55 = vadd.f32 %v314_v47, %v279_v46 }
  0x69   : > { %v657_v56 = vadd.f32 %v641_v38, %v605_v44  ;;  %v502_v57 = vadd.f32 %v466_v41, %v450_v45  ;;  %v468_v58 = vld [vmem:[%s1394_s8 + $0x2e0] sm:$0xff]  ;;  %v418_v59 = vld [vmem:[%s1394_s8 + $0x358] sm:$0xff]  ;;  %v452_v63 = vadd.f32 %v416_v43, %v400_v54  ;;  %v520_v0 = vld [vmem:[%s1394_s8 + $0x2e8] sm:$0xff]  ;;  %v642_v11 = vsel %vm632_vm0, %v622_v53, 0.0 }
  0x6a   : > { %746 = vadd.xlane.f32.xlu1 %v656_v31  ;;  %v278_v60 = vld [vmem:[%s1394_s8 + $0x300] sm:$0xff]  ;;  %v607_v61 = vadd.f32 %v571_v35, %v555_v50  ;;  %v402_v2 = vadd.f32 %v366_v48, %v350_v55  ;;  %v313_v3 = vld [vmem:[%s1394_s8 + $0x308] sm:$0xff]  ;;  %v365_v4 = vld [vmem:[%s1394_s8 + $0x310] sm:$0xff] }
  0x6b   : > { %748 = vadd.xlane.f32.xlu2 %v657_v56  ;;  %v554_v5 = vadd.f32 %v518_v51, %v502_v57  ;;  %v572_v6 = vld [vmem:[%s1394_s8 + $0x2f0] sm:$0xff]  ;;  %v624_v7 = vld [vmem:[%s1394_s8 + $0x2f8] sm:$0xff]  ;;  %v470_v8 = vld [vmem:[%s1394_s8 + $0x360] sm:$0xff]  ;;  %v349_v10 = vadd.f32 %v313_v3, %v278_v60  ;;  %744 = vadd.xlane.f32.xlu0 %v655_v49  ;;  %v504_v12 = vadd.f32 %v468_v58, %v452_v63 }
  0x6c   : > { %v454_v13 = vadd.f32 %v418_v59, %v402_v2  ;;  %v417_v14 = vld [vmem:[%s1394_s8 + $0x318] sm:$0xff]  ;;  %v280_v15 = vld [vmem:[%s1394_s8 + $0x380] sm:$0xff]  ;;  %v315_v16 = vld [vmem:[%s1394_s8 + $0x388] sm:$0xff]  ;;  %v659_v17 = vadd.f32 %v643_v62, %v607_v61  ;;  %v644_v29 = vsel %vm632_vm0, %v624_v7, 0.0 }
  0x6d   : > { %v606_v18 = vadd.f32 %v570_v52, %v554_v5  ;;  %v522_v19 = vld [vmem:[%s1394_s8 + $0x368] sm:$0xff]  ;;  %v574_v20 = vld [vmem:[%s1394_s8 + $0x370] sm:$0xff]  ;;  %v401_v21 = vadd.f32 %v365_v4, %v349_v10  ;;  %v351_v22 = vadd.f32 %v315_v16, %v280_v15  ;;  %v556_v24 = vadd.f32 %v520_v0, %v504_v12  ;;  %v626_v26 = vld [vmem:[%s1394_s8 + $0x378] sm:$0xff] }
  0x6e   : > { %v367_v23 = vld [vmem:[%s1394_s8 + $0x390] sm:$0xff]  ;;  %v506_v25 = vadd.f32 %v470_v8, %v454_v13  ;;  %v469_v27 = vld [vmem:[%s1394_s8 + $0x320] sm:$0xff]  ;;  %v419_v28 = vld [vmem:[%s1394_s8 + $0x398] sm:$0xff]  ;;  %v646_v46 = vsel %vm632_vm0, %v626_v26, 0.0 }
  0x6f   : > { %v453_v30 = vadd.f32 %v417_v14, %v401_v21  ;;  %v403_v31 = vadd.f32 %v367_v23, %v351_v22  ;;  %v281_v32 = vld [vmem:[%s1394_s8 + $0x3c0] sm:$0xff]  ;;  %v316_v33 = vld [vmem:[%s1394_s8 + $0x3c8] sm:$0xff]  ;;  %v368_v34 = vld [vmem:[%s1394_s8 + $0x3d0] sm:$0xff]  ;;  %v658_v35 = vadd.f32 %v642_v11, %v606_v18  ;;  %v608_v36 = vadd.f32 %v572_v6, %v556_v24 }
  0x70   : > { %v558_v37 = vadd.f32 %v522_v19, %v506_v25  ;;  %v521_v38 = vld [vmem:[%s1394_s8 + $0x328] sm:$0xff]  ;;  %v471_v39 = vld [vmem:[%s1394_s8 + $0x3a0] sm:$0xff]  ;;  %v352_v40 = vadd.f32 %v316_v33, %v281_v32  ;;  %v420_v43 = vld [vmem:[%s1394_s8 + $0x3d8] sm:$0xff]  ;;  %v803_v23 = vadd.s32 4294967288, %v1404_v1 }
  0x71   : > { %v505_v41 = vadd.f32 %v469_v27, %v453_v30  ;;  %v455_v42 = vadd.f32 %v419_v28, %v403_v31  ;;  %v660_v44 = vadd.f32 %v644_v29, %v608_v36  ;;  %v573_v47 = vld [vmem:[%s1394_s8 + $0x330] sm:$0xff]  ;;  %v625_v48 = vld [vmem:[%s1394_s8 + $0x338] sm:$0xff]  ;;  %v523_v49 = vld [vmem:[%s1394_s8 + $0x3a8] sm:$0xff] }
  0x72   : > { %752 = vadd.xlane.f32.xlu1 %v659_v17  ;;  %v610_v45 = vadd.f32 %v574_v20, %v558_v37  ;;  %v404_v50 = vadd.f32 %v368_v34, %v352_v40  ;;  %v627_v53 = vld [vmem:[%s1394_s8 + $0x3b8] sm:$0xff]  ;;  %v472_v54 = vld [vmem:[%s1394_s8 + $0x3e0] sm:$0xff]  ;;  %v575_v55 = vld [vmem:[%s1394_s8 + $0x3b0] sm:$0xff]  ;;  %v645_v59 = vsel %vm632_vm0, %v625_v48, 0.0 }
  0x73   : > { %v557_v51 = vadd.f32 %v521_v38, %v505_v41  ;;  %v507_v52 = vadd.f32 %v471_v39, %v455_v42  ;;  %750 = vadd.xlane.f32.xlu0 %v658_v35  ;;  %754 = vadd.xlane.f32.xlu2 %v660_v44  ;;  %v524_v61 = vld [vmem:[%s1394_s8 + $0x3e8] sm:$0xff]  ;;  %v647_v62 = vsel %vm632_vm0, %v627_v53, 0.0  ;;  %v576_v5 = vld [vmem:[%s1394_s8 + $0x3f0] sm:$0xff]  ;;  %v628_v6 = vld [vmem:[%s1394_s8 + $0x3f8] sm:$0xff] }
  0x74   : > { %v456_v56 = vadd.f32 %v420_v43, %v404_v50  ;;  %v662_v57 = vadd.f32 %v646_v46, %v610_v45  ;;  %v648_v8 = vsel %vm632_vm0, %v628_v6, 0.0  ;;  %v781_v17 = vld [vmem:[#allocation6 + $0x8] sm:$0xff]  ;;  %v780_v18 = vld [vmem:[#allocation6] sm:$0xff] }
  0x75   : > { %v609_v58 = vadd.f32 %v573_v47, %v557_v51  ;;  %v559_v60 = vadd.f32 %v523_v49, %v507_v52  ;;  %859 = vmatpush.msra.mxu0 %v781_v17 }
  0x76   : > { %v508_v63 = vadd.f32 %v472_v54, %v456_v56 }
  0x77   : > { %v611_v0 = vadd.f32 %v575_v55, %v559_v60  ;;  %v661_v2 = vadd.f32 %v645_v59, %v609_v58  ;;  %860 = vmatpush.msra.mxu0 %v780_v18 }
  0x78   : > { %v560_v3 = vadd.f32 %v524_v61, %v508_v63 }
  0x79   : > { %v663_v4 = vadd.f32 %v647_v62, %v611_v0 }
  0x7a   : > { %758 = vadd.xlane.f32.xlu1 %v662_v57  ;;  %v612_v7 = vadd.f32 %v576_v5, %v560_v3 }
  0x7b   : > { %756 = vadd.xlane.f32.xlu0 %v661_v2  ;;  %760 = vadd.xlane.f32.xlu2 %v663_v4 }
  0x7c   : > { %v664_v10 = vadd.f32 %v648_v8, %v612_v7 }
  0x83   : > { %762 = vadd.xlane.f32.xlu0 %v664_v10 }
  0xcb   : > { %v741_v11 = vpop.xlane.xlu2 %740 }
  0xcc   : > { %v768_v29 = vmul.f32 0.001, %v741_v11 }
  0xcd   : > { %v737_v12 = vpop.xlane.xlu1 %736 }
  0xce   : > { %v733_v13 = vpop.xlane.xlu0 %732  ;;  %v766_v9 = vmul.f32 0.001, %v737_v12  ;;  %v810_v40 = vperm.slane %v768_v29, %v1404_v1 }
  0xcf   : > { %v764_v27 = vmul.f32 0.001, %v733_v13 }
  0xd0   : > { %v807_v30 = vperm.slane %v766_v9, %v1404_v1 }
  0xd1   : > { %v802_v36 = vperm.slane %v764_v27, %v1404_v1 }
  0xd3   : > { %v743_v15 = vpop.xlane.xlu2 %742 }
  0xd4   : > { %v769_v31 = vmul.f32 0.001, %v743_v15 }
  0xd5   : > { %v739_v14 = vpop.xlane.xlu1 %738 }
  0xd6   : > { %v735_v16 = vpop.xlane.xlu0 %734  ;;  %v767_v24 = vmul.f32 0.001, %v739_v14  ;;  %v811_v41 = vperm.slane %v769_v31, %v803_v23 }
  0xd7   : > { %v765_v25 = vmul.f32 0.001, %v735_v16 }
  0xd8   : > { %v808_v32 = vperm.slane %v767_v24, %v803_v23  ;;  %v812_v54 = vsel %vm805_vm1, %v811_v41, %v810_v40 }
  0xd9   : > { %v804_v33 = vperm.slane %v765_v25, %v803_v23 }
  0xda   : > { %v809_v42 = vsel %vm805_vm1, %v808_v32, %v807_v30 }
  0xdb   : > { %v806_v43 = vsel %vm805_vm1, %v804_v33, %v802_v36 }
  0xdc   : > { %v829_v55 = vsel %vm828_vm2, %v809_v42, %v806_v43 }
  0xdd   : > { %v747_v19 = vpop.xlane.xlu1 %746  ;;  %v831_v63 = vsel %vm830_vm3, %v812_v54, %v829_v55 }
  0xde   : > { %v745_v20 = vpop.xlane.xlu0 %744  ;;  %v749_v21 = vpop.xlane.xlu2 %748  ;;  %v771_v34 = vmul.f32 0.001, %v747_v19 }
  0xdf   : > { %v770_v35 = vmul.f32 0.001, %v745_v20  ;;  %v772_v37 = vmul.f32 0.001, %v749_v21 }
  0xe0   : > { %v814_v45 = vperm.slane %v771_v34, %v803_v23 }
  0xe1   : > { %v813_v46 = vperm.slane %v770_v35, %v1404_v1  ;;  %v816_v49 = vperm.slane %v772_v37, %v1404_v1 }
  0xe3   : > { %v815_v56 = vsel %vm805_vm1, %v814_v45, %v813_v46 }
  0xe4   : > { %v833_v0 = vsel %vm832_vm4, %v815_v56, %v831_v63 }
  0xe5   : > { %v753_v22 = vpop.xlane.xlu1 %752 }
  0xe6   : > { %v751_v26 = vpop.xlane.xlu0 %750  ;;  %v755_v28 = vpop.xlane.xlu2 %754  ;;  %v774_v47 = vmul.f32 0.001, %v753_v22 }
  0xe7   : > { %v773_v38 = vmul.f32 0.001, %v751_v26  ;;  %v775_v48 = vmul.f32 0.001, %v755_v28 }
  0xe8   : > { %v819_v57 = vperm.slane %v774_v47, %v1404_v1 }
  0xe9   : > { %v817_v50 = vperm.slane %v773_v38, %v803_v23  ;;  %v820_v58 = vperm.slane %v775_v48, %v803_v23 }
  0xeb   : > { %v818_v60 = vsel %vm805_vm1, %v817_v50, %v816_v49  ;;  %v821_v3 = vsel %vm805_vm1, %v820_v58, %v819_v57 }
  0xec   : > { %v835_v6 = vsel %vm834_vm5, %v818_v60, %v833_v0 }
  0xed   : > { %v759_v39 = vpop.xlane.xlu1 %758  ;;  %v837_v10 = vsel %vm836_vm6, %v821_v3, %v835_v6 }
  0xee   : > { %v757_v44 = vpop.xlane.xlu0 %756  ;;  %v777_v51 = vmul.f32 0.001, %v759_v39  ;;  %v761_v53 = vpop.xlane.xlu2 %760 }
  0xef   : > { %v776_v52 = vmul.f32 0.001, %v757_v44  ;;  %v778_v59 = vmul.f32 0.001, %v761_v53 }
  0xf0   : > { %v823_v61 = vperm.slane %v777_v51, %v803_v23 }
  0xf1   : > { %v822_v62 = vperm.slane %v776_v52, %v1404_v1  ;;  %v825_v4 = vperm.slane %v778_v59, %v1404_v1  ;;  %v1075_v1 = vld [vmem:[%s1632_s2] ss:$0 sm:$0xff] }
  0xf3   : > { %v824_v7 = vsel %vm805_vm1, %v823_v61, %v822_v62 }
  0xf4   : > { %v839_v12 = vsel %vm838_vm7, %v824_v7, %v837_v10 }
  0xf6   : > { %v763_v2 = vpop.xlane.xlu0 %762 }
  0xf7   : > { %v779_v5 = vmul.f32 0.001, %v763_v2 }
  0xf9   : > { %v826_v8 = vperm.slane %v779_v5, %v803_v23 }
  0xfb   : > { %v827_v11 = vsel %vm805_vm1, %v826_v8, %v825_v4 }
  0xfc   : > { %v841_v13 = vsel %vm840_vm8, %v827_v11, %v839_v12 }
  0xfd   : > { %993 = vmatmul.msk.f32.vlgmr.msra.gmra.mxu0 %vm842_vm9, %v841_v13 }
 0x17a   : > { %v862_v14 = vpop.f32.mrf.mxu0 }
 0x17b   : > { %v863_v15 = vadd.f32 %v1075_v1, %v862_v14 }
 0x17d   : > { %865 = vst [vmem:[%s234_s10] sm:$0xff] %v863_v15 }
 0x17e   : > { %1172 = shalt.err (!%p1169_p13)
}
 0x17f   : > { %1009 = dma.vmem_to_hbm [thread:$0]  (%p1316_p9), %s880_s9, 128, %s882_s24, %s867_s7  }
 0x180 PF: > { %s893_s18 = sand.u32 1, %s1211_s12   ;;  %p1644_p1 = scmp.ge.s32.totalorder %s1231_s17, 2 }
 0x181   : > { %s894_s25 = scalar_lea.sflag [#allocation5], %s893_s18 }
 0x182   : > { %p1016_p2 = pnand %p1644_p1, %p1323_p11 }
 0x184   : > { %p1017_p6 = pneg %p1016_p2 }
 0x186   : > { %1206 = dma.done.wait (%p1017_p6), %s894_s25, 128  }
 0x187   : > { %1208 = vsyncadd (%p1017_p6), %s894_s25, 4294967168  ;;  %s20_s17 = sadd.s32 1, %s1231_s17   ;;  %s1645_s12 = smov %s1215_s13 }
 0x188   : > { %p17_p7 = scmp.ge.s32.totalorder %s20_s17, 4   ;;  %s1646_s13 = smov %s1219_s14 }
 0x189   : > { %s1647_s14 = smov %s1321_s27  ;;  %s1648_s15 = smov %s1227_s16 }
 0x18a   : > { %s1649_s16 = smov %s1651_s20  ;;  %19 = sbr.rel (!%p17_p7) target bundleno = 7 (0x7), region = 89 }
 0x18f   :  { %900 = vsyncpa [#allocation4], 1 }
 0x190   :  { %902 = vsyncpa [#allocation4 + $0x1], 1 }
 0x191   :  { %903 = vsyncpa [#allocation7], 1 }
 0x192   :  { %904 = vsyncpa [#allocation5], 1 }
 0x193   :  { %906 = vsyncpa [#allocation5 + $0x1], 1 }

</bundles_post_ra>
